<compile_context>
chip_gen: v7x
topology: tpu7x:2x2x1
jax: 0.10.0
libtpu: 0.0.40
codegen_flags: <defaults>
</compile_context>

<pallas_src>
import functools

import jax
import jax.numpy as jnp
from jax.experimental import pallas as pl
from jax.experimental.pallas import tpu as pltpu

_LANE = 128          # vreg lane width: OUT dims padded to multiples of this
_SUBLANE = 8         # sublane width: batch tile must be a multiple of this
_MAX_BATCH_TILE = 1024


def _round_up(x, m):
    return ((x + m - 1) // m) * m


def _num_tensorcores():
    """Best-effort TensorCores-per-chip: v7x has 2, v5e/v6e have 1."""
    try:
        kind = jax.devices()[0].device_kind.lower()
    except Exception:
        return 1
    return 2 if ("v7" in kind or "7x" in kind) else 1


def _apply_activation(y, activation: str):
    if activation == "Sigmoid":
        return jax.nn.sigmoid(y)
    if activation == "Tanh":
        return jnp.tanh(y)
    if activation == "ReLU":
        return jnp.maximum(y, 0.0)
    if activation == "GeLU":
        # PyTorch nn.GELU() default is the exact erf form; keep it for parity.
        # (approximate=True is cheaper on the single EUP slot if acceptable.)
        return jax.nn.gelu(y, approximate=False)
    raise ValueError(f"Unsupported activation function: {activation}")


def _fused_mlp_kernel(x_ref, *refs, activation, n_layers, compute_dtype):
    """Chained Linear(+act) layers, all operands VMEM-resident; only logits stored."""
    o_ref = refs[-1]                          # (TM, Dlast_padded)
    h = x_ref[...].astype(jnp.float32)        # (TM, D0) — K of layer 0 unpadded
    for li in range(n_layers):
        w_ref = refs[2 * li]                  # (Din[_p], Dout_p), bf16, VMEM-resident
        b_ref = refs[2 * li + 1]              # (1, Dout_p), f32
        # bf16 MXU operands, f32 accumulation; elementwise math stays f32.
        h = jnp.dot(h.astype(compute_dtype), w_ref[...],
                    preferred_element_type=jnp.float32)
        h = h + b_ref[...].astype(jnp.float32)
        if li != n_layers - 1:
            h = _apply_activation(h, activation)
    o_ref[...] = h.astype(o_ref.dtype)


def fused_mlp(x, padded_params, out_dim, *, activation,
              compute_dtype=jnp.bfloat16):
    """Run the full MLP forward as one batch-tiled Pallas kernel.

    x:             (B, embed_dim) activations (feature dim NOT padded)
    padded_params: list of (w_p(in[_p], out_p) compute_dtype, b_p(1, out_p) f32),
                   padded once at model init.
    out_dim:       number of real (un-padded) logits to return.
    """
    B, D0 = x.shape
    n_layers = len(padded_params)
    assert padded_params[0][0].shape[0] == D0
    d_last_p = padded_params[-1][0].shape[1]

    # Batch tile: one tile per TensorCore for small B (v5e/v6e -> 1 big tile,
    # v7x -> 2 balanced tiles); cap at 1024 rows for large B.
    ncores = _num_tensorcores()
    tm = min(_MAX_BATCH_TILE, _round_up(pl.cdiv(B, ncores), _SUBLANE))
    Bp = _round_up(B, tm)
    if Bp != B:  # pad the batch dim only when actually needed
        x = jnp.zeros((Bp, D0), x.dtype).at[:B].set(x)

    flat_inputs = [x]
    in_specs = [pl.BlockSpec((tm, D0), lambda i: (i, 0))]  # full-extent last dim
    for w_p, b_p in padded_params:
        flat_inputs += [w_p, b_p]
        in_specs += [
            pl.BlockSpec(w_p.shape, lambda i: (0, 0)),  # VMEM-resident weights
            pl.BlockSpec(b_p.shape, lambda i: (0, 0)),
        ]

    # Guard the "all weights VMEM-resident" assumption (v7x has only 64 MiB
    # physical VMEM and default double-buffering ~doubles the footprint).
    resident = sum(w.size * w.dtype.itemsize + b.size * b.dtype.itemsize
                   for w, b in padded_params)
    if 2 * resident > 16 * 1024 * 1024:
        # TODO(synk): add an N/K grid axis ("arbitrary") with an f32 accumulator
        # scratch (or pipeline_mode=pl.Buffered(1) on the weight specs) if the
        # classifier is ever scaled past a few MiB of weights.
        raise ValueError("MLP weights too large for fully VMEM-resident fusion")

    flops = 2 * Bp * sum(w.shape[0] * w.shape[1] for w, _ in padded_params)
    transcendentals = Bp * sum(w.shape[1] for w, _ in padded_params[:-1])
    bytes_accessed = (x.size * x.dtype.itemsize + resident
                      + Bp * d_last_p * x.dtype.itemsize)

    kernel = functools.partial(
        _fused_mlp_kernel, activation=activation, n_layers=n_layers,
        compute_dtype=compute_dtype)

    out_padded = pl.pallas_call(
        kernel,
        out_shape=jax.ShapeDtypeStruct((Bp, d_last_p), x.dtype),
        grid=(Bp // tm,),
        in_specs=in_specs,
        out_specs=pl.BlockSpec((tm, d_last_p), lambda i: (i, 0)),
        compiler_params=pltpu.CompilerParams(
            dimension_semantics=("parallel",),  # shard batch tiles across TCs (v7x)
        ),
        cost_estimate=pl.CostEstimate(
            flops=flops, transcendentals=transcendentals,
            bytes_accessed=bytes_accessed),
    )(*flat_inputs)

    # Strip batch padding and the lane padding of the final logits.
    return out_padded[:B, :out_dim]


class SentimentClassifierPallas:
    """JAX/Pallas equivalent of the PyTorch SentimentClassifier forward pass."""
    # TODO(synk): nn.CrossEntropyLoss is not part of forward() and is not implemented here.

    def __init__(self, embed_dim, num_classes, hidden_dims, activation="Sigmoid",
                 key=jax.random.PRNGKey(0), dtype=jnp.float32,
                 compute_dtype=jnp.bfloat16):
        if activation not in ("Sigmoid", "Tanh", "ReLU", "GeLU"):
            raise ValueError(f"Unsupported activation function: {activation}")
        self.activation = activation
        self.num_classes = num_classes
        self.compute_dtype = compute_dtype

        dims = [embed_dim] + list(hidden_dims) + [num_classes]
        self.params = []         # un-padded (w_t(in,out) f32, b(out,) f32) — reference
        self.padded_params = []  # padded ONCE here (not per forward call)

        for i in range(len(dims) - 1):
            din, dout = dims[i], dims[i + 1]
            key, kw, kb = jax.random.split(key, 3)
            # deterministic init mimicking nn.Linear's U(-1/sqrt(fan_in), 1/sqrt(fan_in))
            bound = 1.0 / (din ** 0.5)
            w = jax.random.uniform(kw, (dout, din), dtype, -bound, bound)  # PyTorch layout
            b = jax.random.uniform(kb, (dout,), dtype, -bound, bound)
            self.params.append((w.T, b))  # store transposed: (in, out)

        # Padding policy:
        #  * layer 0 keeps its true K (= embed_dim): x is passed unpadded.
        #  * every layer's OUT dim is padded to 128 lanes (lane-dense stores /
        #    MXU-friendly tiles). Padded-out columns are zero, and zero-padded
        #    weight ROWS in the next layer keep any activation junk (e.g.
        #    sigmoid(0)=0.5) inert.
        #  * weights are stored in compute_dtype (bf16): half the HBM->VMEM bytes,
        #    native MXU rate; accumulation stays f32 in-kernel.
        pdims = [embed_dim] + [_round_up(d, _LANE) for d in dims[1:]]
        for li, (w_t, b) in enumerate(self.params):
            din, dout = w_t.shape
            din_p, dout_p = pdims[li], pdims[li + 1]
            w_p = (jnp.zeros((din_p, dout_p), compute_dtype)
                   .at[:din, :dout].set(w_t.astype(compute_dtype)))
            b_p = (jnp.zeros((1, dout_p), jnp.float32)
                   .at[0, :dout].set(b.astype(jnp.float32)))
            self.padded_params.append((w_p, b_p))

    def __call__(self, x):
        return fused_mlp(x, self.padded_params, self.num_classes,
                         activation=self.activation,
                         compute_dtype=self.compute_dtype)


if __name__ == "__main__":
    # Small shapes consistent with the module's forward: inp is (batch, embed_dim).
    batch = 256
    embed_dim = 32
    hidden_dims = [64, 32]
    num_classes = 4

    key = jax.random.PRNGKey(0)
    k_model, k_inp = jax.random.split(key)

    model = SentimentClassifierPallas(
        embed_dim, num_classes, hidden_dims, activation="Sigmoid", key=k_model
    )
    x = jax.random.normal(k_inp, (batch, embed_dim), jnp.float32)

    logits = model(x)
    jax.block_until_ready(logits)
    assert logits.shape == (batch, num_classes)

    # Reference 1: pure-JAX path replicating the kernel's numerics exactly
    # (bf16 MXU operands, f32 accumulation, same padded weights).
    ref = x
    n = len(model.padded_params)
    for li, (w_p, b_p) in enumerate(model.padded_params):
        ref = jnp.dot(ref.astype(model.compute_dtype), w_p,
                      preferred_element_type=jnp.float32) + b_p
        if li != n - 1:
            ref = jax.nn.sigmoid(ref)
    ref = ref[:, :num_classes].astype(x.dtype)
    assert jnp.allclose(logits, ref, atol=1e-3, rtol=1e-3), \
        float(jnp.max(jnp.abs(logits - ref)))

    # Reference 2: exact f32 PyTorch-style forward (loose tolerance — the bf16
    # matmul operands are an intentional precision/perf trade-off).
    ref32 = x
    for li, (w_t, b) in enumerate(model.params):
        ref32 = ref32 @ w_t + b
        if li != len(model.params) - 1:
            ref32 = jax.nn.sigmoid(ref32)
    assert jnp.allclose(logits, ref32, atol=5e-2, rtol=5e-2)

    print("KERNEL_OK")
</pallas_src>

<mosaic_0001>
module attributes {stable_mosaic.version = 11 : i64} {
  func.func @_fused_mlp_kernel(%arg0: i32, %arg1: memref<256x32xf32, #tpu.memory_space<vmem>>, %arg2: memref<32x128xbf16, #tpu.memory_space<vmem>>, %arg3: memref<1x128xf32, #tpu.memory_space<vmem>>, %arg4: memref<128x128xbf16, #tpu.memory_space<vmem>>, %arg5: memref<1x128xf32, #tpu.memory_space<vmem>>, %arg6: memref<128x128xbf16, #tpu.memory_space<vmem>>, %arg7: memref<1x128xf32, #tpu.memory_space<vmem>>, %arg8: memref<256x128xf32, #tpu.memory_space<vmem>>) attributes {dimension_semantics = [#tpu.dimension_semantics<parallel>], iteration_bounds = array<i64: 1>, scalar_prefetch = 0 : i64, scratch_operands = 0 : i64, tpu.core_type = #tpu.core_type<tc>, window_params = [{transform_indices = @transform_0, window_bounds = array<i64: 256, 32>}, {pipeline_mode = #tpu.pipeline_mode<synchronous>, transform_indices = @transform_1, window_bounds = array<i64: 32, 128>}, {pipeline_mode = #tpu.pipeline_mode<synchronous>, transform_indices = @transform_2, window_bounds = array<i64: 1, 128>}, {pipeline_mode = #tpu.pipeline_mode<synchronous>, transform_indices = @transform_3, window_bounds = array<i64: 128, 128>}, {pipeline_mode = #tpu.pipeline_mode<synchronous>, transform_indices = @transform_4, window_bounds = array<i64: 1, 128>}, {pipeline_mode = #tpu.pipeline_mode<synchronous>, transform_indices = @transform_5, window_bounds = array<i64: 128, 128>}, {pipeline_mode = #tpu.pipeline_mode<synchronous>, transform_indices = @transform_6, window_bounds = array<i64: 1, 128>}, {transform_indices = @transform_7, window_bounds = array<i64: 256, 128>}]} {
    %c0 = arith.constant 0 : index
    %c0_0 = arith.constant 0 : index
    %0 = vector.load %arg1[%c0, %c0_0] : memref<256x32xf32, #tpu.memory_space<vmem>>, vector<256x32xf32>
    %1 = arith.truncf %0 : vector<256x32xf32> to vector<256x32xbf16>
    %c0_1 = arith.constant 0 : index
    %c0_2 = arith.constant 0 : index
    %2 = vector.load %arg2[%c0_1, %c0_2] : memref<32x128xbf16, #tpu.memory_space<vmem>>, vector<32x128xbf16>
    %cst = arith.constant dense<0.000000e+00> : vector<256x128xf32>
    %3 = tpu.matmul %1, %2, %cst {dimension_numbers = #tpu.dot_dimension_numbers<[1], [0], [0], [1], [0, 0, 1, 1], [], []>} : vector<256x32xbf16>, vector<32x128xbf16>, vector<256x128xf32> -> vector<256x128xf32>
    %c0_3 = arith.constant 0 : index
    %c0_4 = arith.constant 0 : index
    %4 = vector.load %arg3[%c0_3, %c0_4] : memref<1x128xf32, #tpu.memory_space<vmem>>, vector<1x128xf32>
    %5 = vector.broadcast %4 : vector<1x128xf32> to vector<256x128xf32>
    %6 = arith.addf %3, %5 : vector<256x128xf32>
    %7 = arith.negf %6 : vector<256x128xf32>
    %8 = math.exp %7 : vector<256x128xf32>
    %cst_5 = arith.constant 1.000000e+00 : f32
    %9 = vector.broadcast %cst_5 : f32 to vector<256x128xf32>
    %10 = arith.addf %9, %8 : vector<256x128xf32>
    %11 = arith.divf %9, %10 : vector<256x128xf32>
    %12 = arith.truncf %11 : vector<256x128xf32> to vector<256x128xbf16>
    %c0_6 = arith.constant 0 : index
    %c0_7 = arith.constant 0 : index
    %13 = vector.load %arg4[%c0_6, %c0_7] : memref<128x128xbf16, #tpu.memory_space<vmem>>, vector<128x128xbf16>
    %cst_8 = arith.constant dense<0.000000e+00> : vector<256x128xf32>
    %14 = tpu.matmul %12, %13, %cst_8 {dimension_numbers = #tpu.dot_dimension_numbers<[1], [0], [0], [1], [0, 0, 1, 1], [], []>} : vector<256x128xbf16>, vector<128x128xbf16>, vector<256x128xf32> -> vector<256x128xf32>
    %c0_9 = arith.constant 0 : index
    %c0_10 = arith.constant 0 : index
    %15 = vector.load %arg5[%c0_9, %c0_10] : memref<1x128xf32, #tpu.memory_space<vmem>>, vector<1x128xf32>
    %16 = vector.broadcast %15 : vector<1x128xf32> to vector<256x128xf32>
    %17 = arith.addf %14, %16 : vector<256x128xf32>
    %18 = arith.negf %17 : vector<256x128xf32>
    %19 = math.exp %18 : vector<256x128xf32>
    %cst_11 = arith.constant 1.000000e+00 : f32
    %20 = vector.broadcast %cst_11 : f32 to vector<256x128xf32>
    %21 = arith.addf %20, %19 : vector<256x128xf32>
    %22 = arith.divf %20, %21 : vector<256x128xf32>
    %23 = arith.truncf %22 : vector<256x128xf32> to vector<256x128xbf16>
    %c0_12 = arith.constant 0 : index
    %c0_13 = arith.constant 0 : index
    %24 = vector.load %arg6[%c0_12, %c0_13] : memref<128x128xbf16, #tpu.memory_space<vmem>>, vector<128x128xbf16>
    %cst_14 = arith.constant dense<0.000000e+00> : vector<256x128xf32>
    %25 = tpu.matmul %23, %24, %cst_14 {dimension_numbers = #tpu.dot_dimension_numbers<[1], [0], [0], [1], [0, 0, 1, 1], [], []>} : vector<256x128xbf16>, vector<128x128xbf16>, vector<256x128xf32> -> vector<256x128xf32>
    %c0_15 = arith.constant 0 : index
    %c0_16 = arith.constant 0 : index
    %26 = vector.load %arg7[%c0_15, %c0_16] : memref<1x128xf32, #tpu.memory_space<vmem>>, vector<1x128xf32>
    %27 = vector.broadcast %26 : vector<1x128xf32> to vector<256x128xf32>
    %28 = arith.addf %25, %27 : vector<256x128xf32>
    %c0_17 = arith.constant 0 : index
    %c0_18 = arith.constant 0 : index
    %29 = vector.load %arg8[%c0_17, %c0_18] : memref<256x128xf32, #tpu.memory_space<vmem>>, vector<256x128xf32>
    tpu.vector_store %arg8[%c0_17, %c0_18], %28 {strides = array<i32>} : memref<256x128xf32, #tpu.memory_space<vmem>>, vector<256x128xf32>,
    return
  }
  func.func @transform_0(%arg0: i32) -> (i32, i32) {
    %c0_i32 = arith.constant 0 : i32
    %c0_i32_0 = arith.constant 0 : i32
    return %arg0, %c0_i32 : i32, i32
  }
  func.func @transform_1(%arg0: i32) -> (i32, i32) {
    %c0_i32 = arith.constant 0 : i32
    %c0_i32_0 = arith.constant 0 : i32
    %c0_i32_1 = arith.constant 0 : i32
    return %c0_i32, %c0_i32_0 : i32, i32
  }
  func.func @transform_2(%arg0: i32) -> (i32, i32) {
    %c0_i32 = arith.constant 0 : i32
    %c0_i32_0 = arith.constant 0 : i32
    %c0_i32_1 = arith.constant 0 : i32
    return %c0_i32, %c0_i32_0 : i32, i32
  }
  func.func @transform_3(%arg0: i32) -> (i32, i32) {
    %c0_i32 = arith.constant 0 : i32
    %c0_i32_0 = arith.constant 0 : i32
    %c0_i32_1 = arith.constant 0 : i32
    return %c0_i32, %c0_i32_0 : i32, i32
  }
  func.func @transform_4(%arg0: i32) -> (i32, i32) {
    %c0_i32 = arith.constant 0 : i32
    %c0_i32_0 = arith.constant 0 : i32
    %c0_i32_1 = arith.constant 0 : i32
    return %c0_i32, %c0_i32_0 : i32, i32
  }
  func.func @transform_5(%arg0: i32) -> (i32, i32) {
    %c0_i32 = arith.constant 0 : i32
    %c0_i32_0 = arith.constant 0 : i32
    %c0_i32_1 = arith.constant 0 : i32
    return %c0_i32, %c0_i32_0 : i32, i32
  }
  func.func @transform_6(%arg0: i32) -> (i32, i32) {
    %c0_i32 = arith.constant 0 : i32
    %c0_i32_0 = arith.constant 0 : i32
    %c0_i32_1 = arith.constant 0 : i32
    return %c0_i32, %c0_i32_0 : i32, i32
  }
  func.func @transform_7(%arg0: i32) -> (i32, i32) {
    %c0_i32 = arith.constant 0 : i32
    %c0_i32_0 = arith.constant 0 : i32
    return %arg0, %c0_i32 : i32, i32
  }
}

</mosaic_0001>

<bundles_post_ra>
// kernel: tpu_custom_call.1
= control target key start
LH: loop header
LB: loop body
LE: loop exit
PB: predicated region body
PF: predicated region fallthrough
CT: control target
= control target key end

     0   :  { %vm99_vm0 = vcmask 261120   ;;  %s2212_s0 = inlined_call_operand.vmem [shape: f32[256,32], index: 0, kind: input, shape index: {}]   ;;  %s2213_s1 = inlined_call_operand.vmem [shape: bf16[32,128], index: 1, kind: input, shape index: {}]   ;;  %s2214_s2 = inlined_call_operand.vmem [shape: f32[1,128], index: 2, kind: input, shape index: {}]   ;;  %s2215_s3 = inlined_call_operand.vmem [shape: bf16[128,128], index: 3, kind: input, shape index: {}]   ;;  %s2216_s4 = inlined_call_operand.vmem [shape: f32[1,128], index: 4, kind: input, shape index: {}]   ;;  %s2217_s5 = inlined_call_operand.vmem [shape: bf16[128,128], index: 5, kind: input, shape index: {}]   ;;  %s2218_s6 = inlined_call_operand.vmem [shape: f32[1,128], index: 6, kind: input, shape index: {}]   ;;  %s2219_s7 = inlined_call_operand.hbm [shape: f32[256,128], index: 7, kind: output, shape index: {}]  }
   0x1   :  { %v1543_v0 = vld [vmem:[%s2213_s1] sm:$0xff]   ;;  %v1544_v1 = vld [vmem:[%s2213_s1 + $0x8] sm:$0xff]   ;;  %v30_v5 = vld [vmem:[%s2212_s0 + $0x10] sm:$0xff] }
   0x2   :  { %1404 = vmatprep.subr.bf16.mxu0 %v1543_v0  ;;  %v28_v2 = vld [vmem:[%s2212_s0] sm:$0xff]  ;;  %v29_v3 = vld [vmem:[%s2212_s0 + $0x8] sm:$0xff]  ;;  %1536 = vmatprep.subr.bf16.mxu1 %v1543_v0  ;;  %v31_v6 = vld [vmem:[%s2212_s0 + $0x18] sm:$0xff] }
   0x3   :  { %1405 = vmatpush3.bf16.msra.mxu0 %v1543_v0  ;;  %v60_v4 = vpack.c.bf16 %v29_v3, %v28_v2  ;;  %1538 = vmatpush3.bf16.msra.mxu1 %v1543_v0  ;;  %v32_v7 = vld [vmem:[%s2212_s0 + $0x20] sm:$0xff]  ;;  %v33_v8 = vld [vmem:[%s2212_s0 + $0x28] sm:$0xff]  ;;  %v61_v9 = vpack.c.bf16 %v31_v6, %v30_v5  ;;  %v46_v14 = vld [vmem:[%s2212_s0 + $0x90] sm:$0xff] }
   0x4   :  { %1406 = vmatprep.subr.bf16.mxu0 %v1544_v1  ;;  %1537 = vmatprep.subr.bf16.mxu1 %v1544_v1  ;;  %v62_v10 = vpack.c.bf16 %v33_v8, %v32_v7  ;;  %v44_v11 = vld [vmem:[%s2212_s0 + $0x80] sm:$0xff]  ;;  %v45_v12 = vld [vmem:[%s2212_s0 + $0x88] sm:$0xff]  ;;  %v47_v15 = vld [vmem:[%s2212_s0 + $0x98] sm:$0xff] }
   0x5   :  { %1408 = vmatprep.mubr.msk.bf16.mxu0 %vm99_vm0, %v60_v4  ;;  %v68_v13 = vpack.c.bf16 %v45_v12, %v44_v11  ;;  %v48_v16 = vld [vmem:[%s2212_s0 + $0xa0] sm:$0xff]  ;;  %v69_v17 = vpack.c.bf16 %v47_v15, %v46_v14  ;;  %v49_v18 = vld [vmem:[%s2212_s0 + $0xa8] sm:$0xff]  ;;  %v34_v19 = vld [vmem:[%s2212_s0 + $0x30] sm:$0xff] }
   0x6   :  { %v35_v20 = vld [vmem:[%s2212_s0 + $0x38] sm:$0xff]  ;;  %v36_v21 = vld [vmem:[%s2212_s0 + $0x40] sm:$0xff]  ;;  %v70_v22 = vpack.c.bf16 %v49_v18, %v48_v16  ;;  %v37_v23 = vld [vmem:[%s2212_s0 + $0x48] sm:$0xff] }
   0x7   :  { %1407 = vmatpush3.bf16.msra.mxu0 %v1544_v1  ;;  %1539 = vmatpush3.bf16.msra.mxu1 %v1544_v1  ;;  %v50_v24 = vld [vmem:[%s2212_s0 + $0xb0] sm:$0xff]  ;;  %v51_v25 = vld [vmem:[%s2212_s0 + $0xb8] sm:$0xff]  ;;  %v52_v26 = vld [vmem:[%s2212_s0 + $0xc0] sm:$0xff]  ;;  %v63_v28 = vpack.c.bf16 %v35_v20, %v34_v19  ;;  %v64_v29 = vpack.c.bf16 %v37_v23, %v36_v21 }
   0x8   :  { %1424 = vmatprep.mubr.msk.bf16.mxu1 %vm99_vm0, %v68_v13  ;;  %v53_v27 = vld [vmem:[%s2212_s0 + $0xc8] sm:$0xff]  ;;  %v71_v30 = vpack.c.bf16 %v51_v25, %v50_v24  ;;  %v38_v32 = vld [vmem:[%s2212_s0 + $0x50] sm:$0xff]  ;;  %v39_v33 = vld [vmem:[%s2212_s0 + $0x58] sm:$0xff] }
   0x9   :  { %v72_v31 = vpack.c.bf16 %v53_v27, %v52_v26  ;;  %v40_v34 = vld [vmem:[%s2212_s0 + $0x60] sm:$0xff]  ;;  %v41_v35 = vld [vmem:[%s2212_s0 + $0x68] sm:$0xff]  ;;  %v54_v36 = vld [vmem:[%s2212_s0 + $0xd0] sm:$0xff]  ;;  %v65_v40 = vpack.c.bf16 %v39_v33, %v38_v32 }
   0xa   :  { %1409 = vmatmul.mubr.msk.bf16.vlgmr.msra.gmra.mrb[0].mxu0 %vm99_vm0, %v61_v9  ;;  %1425 = vmatmul.mubr.msk.bf16.vlgmr.msra.gmra.mrb[0].mxu1 %vm99_vm0, %v69_v17  ;;  %v55_v37 = vld [vmem:[%s2212_s0 + $0xd8] sm:$0xff]  ;;  %v56_v38 = vld [vmem:[%s2212_s0 + $0xe0] sm:$0xff]  ;;  %v57_v39 = vld [vmem:[%s2212_s0 + $0xe8] sm:$0xff]  ;;  %v66_v41 = vpack.c.bf16 %v41_v35, %v40_v34 }
   0xb   :  { %1412 = vmatprep.mubr.msk.bf16.mxu0 %vm99_vm0, %v62_v10  ;;  %1428 = vmatprep.mubr.msk.bf16.mxu1 %vm99_vm0, %v70_v22  ;;  %v73_v42 = vpack.c.bf16 %v55_v37, %v54_v36 }
  0x12   :  { %1413 = vmatmul.mubr.msk.bf16.gmra.mrb[4].mxu0 %vm99_vm0, %v63_v28  ;;  %1429 = vmatmul.mubr.msk.bf16.gmra.mrb[4].mxu1 %vm99_vm0, %v71_v30 }
  0x13   :  { %1416 = vmatprep.mubr.msk.bf16.mxu0 %vm99_vm0, %v64_v29  ;;  %1432 = vmatprep.mubr.msk.bf16.mxu1 %vm99_vm0, %v72_v31 }
  0x14   :  { %12 = vsyncpa [#allocation3], 0  ;;  %v74_v43 = vpack.c.bf16 %v57_v39, %v56_v38  ;;  %v42_v44 = vld [vmem:[%s2212_s0 + $0x70] sm:$0xff]  ;;  %v43_v45 = vld [vmem:[%s2212_s0 + $0x78] sm:$0xff] }
  0x15   :  { %v58_v46 = vld [vmem:[%s2212_s0 + $0xf0] sm:$0xff]  ;;  %v59_v47 = vld [vmem:[%s2212_s0 + $0xf8] sm:$0xff]  ;;  %v67_v48 = vpack.c.bf16 %v43_v45, %v42_v44  ;;  %v1545_v50 = vld [vmem:[%s2215_s3] sm:$0xff]  }
  0x16   :  { %v75_v49 = vpack.c.bf16 %v59_v47, %v58_v46  ;;  %1440 = vmatprep.subr.bf16.mxu1 %v1545_v50  ;;  %v1546_v51 = vld [vmem:[%s2215_s3 + $0x8] sm:$0xff]   ;;  %v1547_v52 = vld [vmem:[%s2215_s3 + $0x10] sm:$0xff]   ;;  %v1548_v53 = vld [vmem:[%s2215_s3 + $0x18] sm:$0xff]  }
  0x17   :  { %1441 = vmatpush3.bf16.msra.mxu1 %v1545_v50  ;;  %v1549_v54 = vld [vmem:[%s2215_s3 + $0x20] sm:$0xff]   ;;  %v1550_v55 = vld [vmem:[%s2215_s3 + $0x28] sm:$0xff]   ;;  %v1551_v56 = vld [vmem:[%s2215_s3 + $0x30] sm:$0xff]  }
  0x18   :  { %1442 = vmatprep.subr.bf16.mxu1 %v1546_v51  ;;  %v1552_v57 = vld [vmem:[%s2215_s3 + $0x38] sm:$0xff]   ;;  %v2029_v58 = vld [vmem:[%s2214_s2] ss:$0 sm:$0xff] }
  0x1a   :  { %1417 = vmatmul.mubr.msk.bf16.gmra.mrb[8].mxu0 %vm99_vm0, %v65_v40  ;;  %1433 = vmatmul.mubr.msk.bf16.gmra.mrb[8].mxu1 %vm99_vm0, %v73_v42 }
  0x1b   :  { %1420 = vmatprep.mubr.msk.bf16.mxu0 %vm99_vm0, %v66_v41  ;;  %1436 = vmatprep.mubr.msk.bf16.mxu1 %vm99_vm0, %v74_v43 }
  0x1c   :  { %1443 = vmatpush3.bf16.msra.mxu1 %v1546_v51 }
  0x1d   :  { %1444 = vmatprep.subr.bf16.mxu1 %v1547_v52 }
  0x20   :  { %1445 = vmatpush3.bf16.msra.mxu1 %v1547_v52 }
  0x21   :  { %1446 = vmatprep.subr.bf16.mxu1 %v1548_v53 }
  0x22   :  { %1421 = vmatmul.mubr.msk.bf16.gmra.mrb[12].mxu0 %vm99_vm0, %v67_v48  ;;  %1437 = vmatmul.mubr.msk.bf16.gmra.mrb[12].mxu1 %vm99_vm0, %v75_v49 }
  0x24   :  { %1447 = vmatpush3.bf16.msra.mxu1 %v1548_v53 }
  0x25   :  { %1448 = vmatprep.subr.bf16.mxu1 %v1549_v54 }
  0x28   :  { %1449 = vmatpush3.bf16.msra.mxu1 %v1549_v54 }
  0x29   :  { %1450 = vmatprep.subr.bf16.mxu1 %v1550_v55 }
  0x2c   :  { %1451 = vmatpush3.bf16.msra.mxu1 %v1550_v55 }
  0x2d   :  { %1452 = vmatprep.subr.bf16.mxu1 %v1551_v56 }
  0x30   :  { %1453 = vmatpush3.bf16.msra.mxu1 %v1551_v56 }
  0x31   :  { %1454 = vmatprep.subr.bf16.mxu1 %v1552_v57 }
  0x34   :  { %1455 = vmatpush3.bf16.msra.mxu1 %v1552_v57 }
  0xdd   :  { %v1410_v59 = vpop.f32.mrb[0].mxu0  ;;  %v1426_v62 = vpop.f32.mrb[0].mxu1 }
  0xde   :  { %v191_v60 = vadd.f32 %v1410_v59, %v2029_v58  ;;  %v182_v61 = vpop.f32.mrb[1].mxu0  ;;  %v255_v1 = vadd.f32 %v1426_v62, %v2029_v58  ;;  %v246_v2 = vpop.f32.mrb[1].mxu1 }
  0xdf   :  { %v183_v63 = vadd.f32 %v2029_v58, %v182_v61  ;;  %v1411_v0 = vpop.f32.mrb[2].mxu0  ;;  %v247_v6 = vadd.f32 %v2029_v58, %v246_v2  ;;  %v1427_v7 = vpop.f32.mrb[2].mxu1 }
  0xe0   :  { %v1258_v3 = vmul.f32 -1.442695, %v191_v60  ;;  %v194_v4 = vadd.f32 %v1411_v0, %v2029_v58  ;;  %v185_v5 = vpop.f32.mrb[3].mxu0  ;;  %v258_v10 = vadd.f32 %v1427_v7, %v2029_v58  ;;  %v249_v11 = vpop.f32.mrb[3].mxu1  ;;  %v1274_v14 = vmul.f32 -1.442695, %v255_v1 }
  0xe1   :  { %v1256_v8 = vmul.f32 -1.442695, %v183_v63  ;;  %v186_v9 = vadd.f32 %v2029_v58, %v185_v5  ;;  %v1272_v15 = vmul.f32 -1.442695, %v247_v6  ;;  %v250_v20 = vadd.f32 %v2029_v58, %v249_v11 }
  0xe2   :  { %1561 = vpow2.f32 %v1258_v3  ;;  %v1259_v12 = vmul.f32 -1.442695, %v194_v4  ;;  %v1275_v17 = vmul.f32 -1.442695, %v258_v10 }
  0xe3   :  { %1563 = vpow2.f32 %v1256_v8  ;;  %v1257_v13 = vmul.f32 -1.442695, %v186_v9  ;;  %v1273_v33 = vmul.f32 -1.442695, %v250_v20 }
  0xe4   :  { %1565 = vpow2.f32 %v1259_v12 }
  0xe5   :  { %1567 = vpow2.f32 %v1257_v13  ;;  %v1414_v16 = vpop.f32.mrb[4].mxu0  ;;  %v2040_v21 = vpop.f32.mrb[4].mxu1 }
  0xe6   :  { %v207_v18 = vadd.f32 %v1414_v16, %v2029_v58  ;;  %v198_v19 = vpop.f32.mrb[5].mxu0  ;;  %1569 = vpow2.f32 %v1274_v14  ;;  %v2043_v24 = vpop.f32.mrb[5].mxu1 }
  0xe7   :  { %v199_v22 = vadd.f32 %v2029_v58, %v198_v19  ;;  %v1415_v23 = vpop.f32.mrb[6].mxu0  ;;  %1571 = vpow2.f32 %v1272_v15  ;;  %v2046_v28 = vpop.f32.mrb[6].mxu1 }
  0xe8   :  { %v1262_v25 = vmul.f32 -1.442695, %v207_v18  ;;  %v210_v26 = vadd.f32 %v1415_v23, %v2029_v58  ;;  %v201_v27 = vpop.f32.mrb[7].mxu0  ;;  %1573 = vpow2.f32 %v1275_v17  ;;  %v2049_v31 = vpop.f32.mrb[7].mxu1 }
  0xe9   :  { %v1260_v29 = vmul.f32 -1.442695, %v199_v22  ;;  %v202_v30 = vadd.f32 %v2029_v58, %v201_v27 }
  0xea   :  { %1575 = vpow2.f32 %v1262_v25  ;;  %v1263_v32 = vmul.f32 -1.442695, %v210_v26 }
  0xeb   :  { %1577 = vpow2.f32 %v1260_v29  ;;  %v1261_v34 = vmul.f32 -1.442695, %v202_v30 }
  0xec   :  { %v1562_v35 = vpop.eup %1561  ;;  %1579 = vpow2.f32 %v1263_v32 }
  0xed   :  { %v1564_v36 = vpop.eup %1563  ;;  %v407_v37 = vadd.f32 1.0, %v1562_v35  ;;  %1581 = vpow2.f32 %v1261_v34  ;;  %v1418_v38 = vpop.f32.mrb[8].mxu0 }
  0xee   :  { %v1566_v39 = vpop.eup %1565  ;;  %v405_v40 = vadd.f32 1.0, %v1564_v36  ;;  %v223_v41 = vadd.f32 %v1418_v38, %v2029_v58  ;;  %v214_v42 = vpop.f32.mrb[9].mxu0  ;;  %1583 = vpow2.f32 %v1273_v33 }
  0xef   :  { %v2052_v43 = vpop.f32.mrb[8].mxu1  ;;  %v1568_v44 = vpop.eup %1567  ;;  %1585 = vrcp.f32 %v407_v37  ;;  %v408_v45 = vadd.f32 1.0, %v1566_v39  ;;  %v215_v46 = vadd.f32 %v2029_v58, %v214_v42 }
  0xf0   :  { %v1419_v47 = vpop.f32.mrb[10].mxu0  ;;  %v2055_v48 = vpop.f32.mrb[9].mxu1  ;;  %1587 = vrcp.f32 %v405_v40  ;;  %v406_v49 = vadd.f32 1.0, %v1568_v44  ;;  %v1266_v50 = vmul.f32 -1.442695, %v223_v41  ;;  %v271_v40 = vadd.f32 %v2040_v21, %v2029_v58 }
  0xf1   :  { %v226_v51 = vadd.f32 %v1419_v47, %v2029_v58  ;;  %v217_v52 = vpop.f32.mrb[11].mxu0  ;;  %v2058_v53 = vpop.f32.mrb[10].mxu1  ;;  %1589 = vrcp.f32 %v408_v45  ;;  %v1264_v55 = vmul.f32 -1.442695, %v215_v46  ;;  %v263_v21 = vadd.f32 %v2029_v58, %v2043_v24 }
  0xf2   :  { %v1570_v54 = vpop.eup %1569  ;;  %v218_v56 = vadd.f32 %v2029_v58, %v217_v52  ;;  %v2061_v57 = vpop.f32.mrb[11].mxu1  ;;  %1591 = vrcp.f32 %v406_v49  ;;  %v1278_v52 = vmul.f32 -1.442695, %v271_v40  ;;  %v287_v24 = vadd.f32 %v2052_v43, %v2029_v58 }
  0xf3   :  { %v1572_v59 = vpop.eup %1571  ;;  %v1267_v60 = vmul.f32 -1.442695, %v226_v51  ;;  %1593 = vpow2.f32 %v1266_v50  ;;  %v423_v30 = vadd.f32 1.0, %v1570_v54  ;;  %v282_v43 = vadd.f32 %v2029_v58, %v2061_v57 }
  0xf4   :  { %v1574_v61 = vpop.eup %1573  ;;  %v1265_v62 = vmul.f32 -1.442695, %v218_v56  ;;  %1595 = vpow2.f32 %v1264_v55  ;;  %v421_v44 = vadd.f32 1.0, %v1572_v59  ;;  %v274_v59 = vadd.f32 %v2046_v28, %v2029_v58 }
  0xf5   :  { %v1576_v63 = vpop.eup %1575  ;;  %1597 = vpow2.f32 %v1267_v60  ;;  %v1422_v2 = vpop.f32.mrb[12].mxu0  ;;  %v424_v47 = vadd.f32 1.0, %v1574_v61  ;;  %v279_v28 = vadd.f32 %v2029_v58, %v2055_v48 }
  0xf6   :  { %v1578_v0 = vpop.eup %1577  ;;  %v411_v1 = vadd.f32 1.0, %v1576_v63  ;;  %1599 = vpow2.f32 %v1265_v62  ;;  %v239_v5 = vadd.f32 %v1422_v2, %v2029_v58  ;;  %v230_v6 = vpop.f32.mrb[13].mxu0  ;;  %v266_v63 = vadd.f32 %v2029_v58, %v2049_v31 }
  0xf7   :  { %v1580_v3 = vpop.eup %1579  ;;  %v409_v4 = vadd.f32 1.0, %v1578_v0  ;;  %v2064_v7 = vpop.f32.mrb[12].mxu1  ;;  %v231_v10 = vadd.f32 %v2029_v58, %v230_v6  ;;  %v1279_v31 = vmul.f32 -1.442695, %v274_v59 }
  0xf8   :  { %v1582_v8 = vpop.eup %1581  ;;  %1601 = vrcp.f32 %v411_v1  ;;  %v412_v9 = vadd.f32 1.0, %v1580_v3  ;;  %v1423_v11 = vpop.f32.mrb[14].mxu0  ;;  %v1270_v15 = vmul.f32 -1.442695, %v239_v5  ;;  %v303_v48 = vadd.f32 %v2064_v7, %v2029_v58 }
  0xf9   :  { %v2067_v12 = vpop.f32.mrb[13].mxu1  ;;  %v1584_v13 = vpop.eup %1583  ;;  %1603 = vrcp.f32 %v409_v4  ;;  %v410_v14 = vadd.f32 1.0, %v1582_v8  ;;  %v242_v16 = vadd.f32 %v1423_v11, %v2029_v58  ;;  %v1268_v20 = vmul.f32 -1.442695, %v231_v10 }
  0xfa   :  { %v233_v17 = vpop.f32.mrb[15].mxu0  ;;  %v2070_v18 = vpop.f32.mrb[14].mxu1  ;;  %1605 = vrcp.f32 %v412_v9  ;;  %v422_v50 = vadd.f32 1.0, %v1584_v13  ;;  %v1276_v4 = vmul.f32 -1.442695, %v263_v21  ;;  %v290_v8 = vadd.f32 %v2058_v53, %v2029_v58 }
  0xfb   :  { %v1586_v19 = vpop.eup %1585  ;;  %v234_v22 = vadd.f32 %v2029_v58, %v233_v17  ;;  %v2073_v23 = vpop.f32.mrb[15].mxu1  ;;  %1607 = vrcp.f32 %v410_v14  ;;  %v1271_v26 = vmul.f32 -1.442695, %v242_v16  ;;  %v1277_v10 = vmul.f32 -1.442695, %v266_v63 }
  0xfc   :  { %v1588_v25 = vpop.eup %1587  ;;  %1609 = vpow2.f32 %v1270_v15  ;;  %v1282_v13 = vmul.f32 -1.442695, %v287_v24  ;;  %v1280_v15 = vmul.f32 -1.442695, %v279_v28  ;;  %v295_v16 = vadd.f32 %v2029_v58, %v2067_v12 }
  0xfd   :  { %v1590_v27 = vpop.eup %1589  ;;  %v1269_v29 = vmul.f32 -1.442695, %v234_v22  ;;  %1611 = vpow2.f32 %v1268_v20  ;;  %v1283_v53 = vmul.f32 -1.442695, %v290_v8  ;;  %v306_v20 = vadd.f32 %v2070_v18, %v2029_v58 }
  0xfe   :  { %v1592_v32 = vpop.eup %1591  ;;  %v502_v33 = vpack.c.bf16 %v1590_v27, %v1586_v19  ;;  %1613 = vpow2.f32 %v1271_v26  ;;  %v1281_v22 = vmul.f32 -1.442695, %v282_v43  ;;  %v298_v7 = vadd.f32 %v2029_v58, %v2073_v23 }
  0xff   :  { %v1594_v34 = vpop.eup %1593  ;;  %v501_v35 = vpack.c.bf16 %v1592_v32, %v1588_v25  ;;  %1615 = vpow2.f32 %v1269_v29  ;;  %v1286_v27 = vmul.f32 -1.442695, %v303_v48  ;;  %v1284_v12 = vmul.f32 -1.442695, %v295_v16 }
 0x100   :  { %v1596_v36 = vpop.eup %1595  ;;  %v415_v37 = vadd.f32 1.0, %v1594_v34  ;;  %1617 = vrcp.f32 %v423_v30  ;;  %v1287_v18 = vmul.f32 -1.442695, %v306_v20  ;;  %v1556_v20 = vld [vmem:[%s2217_s5 + $0x18] sm:$0xff]  }
 0x101   :  { %v1598_v38 = vpop.eup %1597  ;;  %v413_v39 = vadd.f32 1.0, %v1596_v36  ;;  %1456 = vmatprep.mubr.bf16.mxu1 %v501_v35  ;;  %v1285_v35 = vmul.f32 -1.442695, %v298_v7  ;;  %v1560_v7 = vld [vmem:[%s2217_s5 + $0x38] sm:$0xff]  }
 0x102   :  { %v1600_v41 = vpop.eup %1599  ;;  %1619 = vrcp.f32 %v415_v37  ;;  %v416_v42 = vadd.f32 1.0, %v1598_v38  ;;  %1457 = vmatmul.mubr.bf16.vlgmr.msra.gmra.mrb[16].mxu1 %v502_v33 }
 0x103   :  { %v1602_v45 = vpop.eup %1601  ;;  %1621 = vrcp.f32 %v413_v39  ;;  %v414_v46 = vadd.f32 1.0, %v1600_v41 }
 0x104   :  { %v1604_v49 = vpop.eup %1603  ;;  %1623 = vrcp.f32 %v416_v42 }
 0x105   :  { %v1606_v51 = vpop.eup %1605  ;;  %1625 = vrcp.f32 %v414_v46 }
 0x106   :  { %v1608_v54 = vpop.eup %1607  ;;  %1627 = vrcp.f32 %v421_v44  ;;  %v504_v55 = vpack.c.bf16 %v1606_v51, %v1602_v45 }
 0x107   :  { %v1610_v56 = vpop.eup %1609  ;;  %1629 = vrcp.f32 %v424_v47  ;;  %v503_v60 = vpack.c.bf16 %v1608_v54, %v1604_v49 }
 0x108   :  { %v1612_v62 = vpop.eup %1611  ;;  %v419_v61 = vadd.f32 1.0, %v1610_v56  ;;  %1631 = vrcp.f32 %v422_v50 }
 0x109   :  { %v1614_v0 = vpop.eup %1613  ;;  %v417_v1 = vadd.f32 1.0, %v1612_v62  ;;  %1633 = vpow2.f32 %v1278_v52  ;;  %1460 = vmatprep.mubr.bf16.mxu1 %v503_v60 }
 0x10a   :  { %v1616_v2 = vpop.eup %1615  ;;  %1635 = vrcp.f32 %v419_v61  ;;  %v420_v3 = vadd.f32 1.0, %v1614_v0  ;;  %1461 = vmatmul.mubr.bf16.gmra.mrb[20].mxu1 %v504_v55 }
 0x10b   :  { %v2087_v5 = vpop.eup %1617  ;;  %1637 = vrcp.f32 %v417_v1  ;;  %v418_v6 = vadd.f32 1.0, %v1616_v2 }
 0x10c   :  { %v1620_v9 = vpop.eup %1619  ;;  %1639 = vrcp.f32 %v420_v3 }
 0x10d   :  { %v1622_v11 = vpop.eup %1621  ;;  %1641 = vrcp.f32 %v418_v6 }
 0x10e   :  { %v1624_v14 = vpop.eup %1623  ;;  %1643 = vpow2.f32 %v1276_v4 }
 0x10f   :  { %v1626_v17 = vpop.eup %1625  ;;  %1645 = vpow2.f32 %v1279_v31  ;;  %v506_v19 = vpack.c.bf16 %v1624_v14, %v1620_v9 }
 0x110   :  { %v1628_v57 = vpop.eup %1627  ;;  %1647 = vpow2.f32 %v1277_v10  ;;  %v505_v25 = vpack.c.bf16 %v1626_v17, %v1622_v11  ;;  %v1553_v17 = vld [vmem:[%s2217_s5] sm:$0xff]  }
 0x111   :  { %v1630_v26 = vpop.eup %1629  ;;  %1649 = vpow2.f32 %v1282_v13  ;;  %1488 = vmatprep.subr.bf16.mxu0 %v1553_v17 }
 0x112   :  { %v1632_v29 = vpop.eup %1631  ;;  %1651 = vpow2.f32 %v1280_v15  ;;  %1464 = vmatprep.mubr.bf16.mxu1 %v505_v25  ;;  %v510_v30 = vpack.c.bf16 %v1630_v26, %v2087_v5  ;;  %1489 = vmatpush3.bf16.msra.mxu0 %v1553_v17  ;;  %v1559_v25 = vld [vmem:[%s2217_s5 + $0x30] sm:$0xff]   ;;  %v2129_v26 = vld [vmem:[%s2216_s4] ss:$0 sm:$0xff] }
 0x113   :  { %v1634_v32 = vpop.eup %1633  ;;  %1653 = vpow2.f32 %v1283_v53  ;;  %1465 = vmatmul.mubr.bf16.gmra.mrb[24].mxu1 %v506_v19  ;;  %v509_v33 = vpack.c.bf16 %v1632_v29, %v1628_v57  ;;  %v1554_v53 = vld [vmem:[%s2217_s5 + $0x8] sm:$0xff]   ;;  %v1555_v19 = vld [vmem:[%s2217_s5 + $0x10] sm:$0xff]   ;;  %v1557_v57 = vld [vmem:[%s2217_s5 + $0x20] sm:$0xff]  }
 0x114   :  { %v1636_v34 = vpop.eup %1635  ;;  %1655 = vpow2.f32 %v1281_v22  ;;  %v427_v23 = vadd.f32 1.0, %v1634_v32  ;;  %1490 = vmatprep.subr.bf16.mxu0 %v1554_v53  ;;  %v1558_v22 = vld [vmem:[%s2217_s5 + $0x28] sm:$0xff]  }
 0x115   :  { %v1638_v36 = vpop.eup %1637  ;;  %1657 = vpow2.f32 %v1286_v27 }
 0x116   :  { %v1640_v58 = vpop.eup %1639  ;;  %1659 = vpow2.f32 %v1284_v12  ;;  %1491 = vmatpush3.bf16.msra.mxu0 %v1554_v53 }
 0x117   :  { %v1642_v37 = vpop.eup %1641  ;;  %1661 = vpow2.f32 %v1287_v18  ;;  %v508_v38 = vpack.c.bf16 %v1640_v58, %v1636_v34  ;;  %1492 = vmatprep.subr.bf16.mxu0 %v1555_v19 }
 0x118   :  { %v1644_v39 = vpop.eup %1643  ;;  %1663 = vpow2.f32 %v1285_v35  ;;  %v507_v40 = vpack.c.bf16 %v1642_v37, %v1638_v36 }
 0x119   :  { %v1646_v41 = vpop.eup %1645  ;;  %v425_v42 = vadd.f32 1.0, %v1644_v39  ;;  %1665 = vrcp.f32 %v427_v23 }
 0x11a   :  { %v1648_v44 = vpop.eup %1647  ;;  %v428_v45 = vadd.f32 1.0, %v1646_v41  ;;  %1468 = vmatprep.mubr.bf16.mxu1 %v507_v40  ;;  %1493 = vmatpush3.bf16.msra.mxu0 %v1555_v19 }
 0x11b   :  { %v1650_v46 = vpop.eup %1649  ;;  %1667 = vrcp.f32 %v425_v42  ;;  %v426_v47 = vadd.f32 1.0, %v1648_v44  ;;  %1469 = vmatmul.mubr.bf16.gmra.mrb[28].mxu1 %v508_v38  ;;  %1494 = vmatprep.subr.bf16.mxu0 %v1556_v20 }
 0x11c   :  { %v1652_v49 = vpop.eup %1651  ;;  %1669 = vrcp.f32 %v428_v45  ;;  %v431_v50 = vadd.f32 1.0, %v1650_v46  ;;  %1472 = vmatprep.mubr.bf16.mxu1 %v509_v33 }
 0x11d   :  { %v1654_v51 = vpop.eup %1653  ;;  %1671 = vrcp.f32 %v426_v47  ;;  %v429_v52 = vadd.f32 1.0, %v1652_v49 }
 0x11e   :  { %v1656_v54 = vpop.eup %1655  ;;  %1673 = vrcp.f32 %v431_v50  ;;  %v432_v21 = vadd.f32 1.0, %v1654_v51  ;;  %1495 = vmatpush3.bf16.msra.mxu0 %v1556_v20 }
 0x11f   :  { %v1658_v55 = vpop.eup %1657  ;;  %1675 = vrcp.f32 %v429_v52  ;;  %v430_v56 = vadd.f32 1.0, %v1656_v54  ;;  %1496 = vmatprep.subr.bf16.mxu0 %v1557_v57 }
 0x120   :  { %v1660_v59 = vpop.eup %1659  ;;  %1677 = vrcp.f32 %v432_v21  ;;  %v435_v60 = vadd.f32 1.0, %v1658_v55 }
 0x121   :  { %v1662_v62 = vpop.eup %1661  ;;  %1679 = vrcp.f32 %v430_v56  ;;  %v433_v61 = vadd.f32 1.0, %v1660_v59 }
 0x122   :  { %v1664_v63 = vpop.eup %1663  ;;  %1681 = vrcp.f32 %v435_v60  ;;  %v436_v0 = vadd.f32 1.0, %v1662_v62  ;;  %1497 = vmatpush3.bf16.msra.mxu0 %v1557_v57 }
 0x123   :  { %1683 = vrcp.f32 %v433_v61  ;;  %v434_v1 = vadd.f32 1.0, %v1664_v63  ;;  %1473 = vmatmul.mubr.bf16.gmra.mrb[32].mxu1 %v510_v30  ;;  %v1666_v24 = vpop.eup %1665  ;;  %1498 = vmatprep.subr.bf16.mxu0 %v1558_v22 }
 0x124   :  { %1685 = vrcp.f32 %v436_v0 }
 0x125   :  { %v1668_v2 = vpop.eup %1667  ;;  %1687 = vrcp.f32 %v434_v1 }
 0x126   :  { %v1670_v3 = vpop.eup %1669  ;;  %1499 = vmatpush3.bf16.msra.mxu0 %v1558_v22 }
 0x127   :  { %v1672_v4 = vpop.eup %1671  ;;  %v512_v28 = vpack.c.bf16 %v1670_v3, %v1666_v24  ;;  %1500 = vmatprep.subr.bf16.mxu0 %v1559_v25 }
 0x128   :  { %v1674_v5 = vpop.eup %1673  ;;  %v511_v6 = vpack.c.bf16 %v1672_v4, %v1668_v2 }
 0x129   :  { %v1676_v31 = vpop.eup %1675 }
 0x12a   :  { %v1678_v8 = vpop.eup %1677  ;;  %1476 = vmatprep.mubr.bf16.mxu1 %v511_v6  ;;  %1501 = vmatpush3.bf16.msra.mxu0 %v1559_v25 }
 0x12b   :  { %v1680_v9 = vpop.eup %1679  ;;  %1477 = vmatmul.mubr.bf16.gmra.mrb[36].mxu1 %v512_v28  ;;  %v514_v10 = vpack.c.bf16 %v1678_v8, %v1674_v5  ;;  %1502 = vmatprep.subr.bf16.mxu0 %v1560_v7 }
 0x12c   :  { %v1682_v43 = vpop.eup %1681  ;;  %v513_v11 = vpack.c.bf16 %v1680_v9, %v1676_v31 }
 0x12d   :  { %v1684_v13 = vpop.eup %1683 }
 0x12e   :  { %v1686_v48 = vpop.eup %1685  ;;  %1480 = vmatprep.mubr.bf16.mxu1 %v513_v11  ;;  %1503 = vmatpush3.bf16.msra.mxu0 %v1560_v7 }
 0x12f   :  { %v1688_v14 = vpop.eup %1687  ;;  %v516_v15 = vpack.c.bf16 %v1686_v48, %v1682_v43 }
 0x130   :  { %v515_v16 = vpack.c.bf16 %v1688_v14, %v1684_v13 }
 0x133   :  { %1481 = vmatmul.mubr.bf16.gmra.mrb[40].mxu1 %v514_v10 }
 0x134   :  { %1484 = vmatprep.mubr.bf16.mxu1 %v515_v16 }
 0x13b   :  { %1485 = vmatmul.mubr.bf16.gmra.mrb[44].mxu1 %v516_v15 }
 0x1d5   :  { %v1458_v27 = vpop.f32.mrb[16].mxu1 }
 0x1d6   :  { %v631_v29 = vadd.f32 %v1458_v27, %v2129_v26  ;;  %v622_v12 = vpop.f32.mrb[17].mxu1 }
 0x1d7   :  { %v623_v30 = vadd.f32 %v2129_v26, %v622_v12  ;;  %v1459_v32 = vpop.f32.mrb[18].mxu1 }
 0x1d8   :  { %v1299_v18 = vmul.f32 -1.442695, %v631_v29  ;;  %v634_v33 = vadd.f32 %v1459_v32, %v2129_v26  ;;  %v625_v34 = vpop.f32.mrb[19].mxu1 }
 0x1d9   :  { %v1297_v35 = vmul.f32 -1.442695, %v623_v30  ;;  %v626_v36 = vadd.f32 %v2129_v26, %v625_v34 }
 0x1da   :  { %1689 = vpow2.f32 %v1299_v18  ;;  %v1300_v58 = vmul.f32 -1.442695, %v634_v33 }
 0x1db   :  { %1691 = vpow2.f32 %v1297_v35  ;;  %v1298_v23 = vmul.f32 -1.442695, %v626_v36 }
 0x1dc   :  { %1693 = vpow2.f32 %v1300_v58 }
 0x1dd   :  { %1695 = vpow2.f32 %v1298_v23  ;;  %v1462_v37 = vpop.f32.mrb[20].mxu1 }
 0x1de   :  { %v647_v38 = vadd.f32 %v1462_v37, %v2129_v26  ;;  %v638_v39 = vpop.f32.mrb[21].mxu1 }
 0x1df   :  { %v639_v40 = vadd.f32 %v2129_v26, %v638_v39  ;;  %v1463_v41 = vpop.f32.mrb[22].mxu1 }
 0x1e0   :  { %v1303_v42 = vmul.f32 -1.442695, %v647_v38  ;;  %v650_v44 = vadd.f32 %v1463_v41, %v2129_v26  ;;  %v641_v45 = vpop.f32.mrb[23].mxu1 }
 0x1e1   :  { %v1301_v46 = vmul.f32 -1.442695, %v639_v40  ;;  %v642_v47 = vadd.f32 %v2129_v26, %v641_v45 }
 0x1e2   :  { %1697 = vpow2.f32 %v1303_v42  ;;  %v1304_v49 = vmul.f32 -1.442695, %v650_v44 }
 0x1e3   :  { %1699 = vpow2.f32 %v1301_v46  ;;  %v1302_v50 = vmul.f32 -1.442695, %v642_v47 }
 0x1e4   :  { %v1690_v51 = vpop.eup %1689  ;;  %1701 = vpow2.f32 %v1304_v49 }
 0x1e5   :  { %v1692_v52 = vpop.eup %1691  ;;  %v847_v54 = vadd.f32 1.0, %v1690_v51  ;;  %1703 = vpow2.f32 %v1302_v50 }
 0x1e6   :  { %v1694_v21 = vpop.eup %1693  ;;  %v845_v55 = vadd.f32 1.0, %v1692_v52  ;;  %v1466_v56 = vpop.f32.mrb[24].mxu1 }
 0x1e7   :  { %v1696_v59 = vpop.eup %1695  ;;  %1705 = vrcp.f32 %v847_v54  ;;  %v848_v60 = vadd.f32 1.0, %v1694_v21  ;;  %v663_v62 = vadd.f32 %v1466_v56, %v2129_v26  ;;  %v654_v61 = vpop.f32.mrb[25].mxu1 }
 0x1e8   :  { %1707 = vrcp.f32 %v845_v55  ;;  %v846_v63 = vadd.f32 1.0, %v1696_v59  ;;  %v655_v0 = vadd.f32 %v2129_v26, %v654_v61  ;;  %v1467_v1 = vpop.f32.mrb[26].mxu1 }
 0x1e9   :  { %1709 = vrcp.f32 %v848_v60  ;;  %v1307_v24 = vmul.f32 -1.442695, %v663_v62  ;;  %v666_v2 = vadd.f32 %v1467_v1, %v2129_v26  ;;  %v657_v3 = vpop.f32.mrb[27].mxu1 }
 0x1ea   :  { %1711 = vrcp.f32 %v846_v63  ;;  %v1305_v4 = vmul.f32 -1.442695, %v655_v0  ;;  %v658_v28 = vadd.f32 %v2129_v26, %v657_v3 }
 0x1eb   :  { %1713 = vpow2.f32 %v1307_v24  ;;  %v1308_v5 = vmul.f32 -1.442695, %v666_v2 }
 0x1ec   :  { %v1698_v6 = vpop.eup %1697  ;;  %1715 = vpow2.f32 %v1305_v4  ;;  %v1306_v31 = vmul.f32 -1.442695, %v658_v28 }
 0x1ed   :  { %v1700_v8 = vpop.eup %1699  ;;  %v851_v9 = vadd.f32 1.0, %v1698_v6  ;;  %1717 = vpow2.f32 %v1308_v5 }
 0x1ee   :  { %v1702_v10 = vpop.eup %1701  ;;  %v849_v43 = vadd.f32 1.0, %v1700_v8  ;;  %1719 = vpow2.f32 %v1306_v31  ;;  %v1470_v11 = vpop.f32.mrb[28].mxu1 }
 0x1ef   :  { %v1704_v13 = vpop.eup %1703  ;;  %1721 = vrcp.f32 %v851_v9  ;;  %v852_v48 = vadd.f32 1.0, %v1702_v10  ;;  %v679_v14 = vadd.f32 %v1470_v11, %v2129_v26  ;;  %v670_v15 = vpop.f32.mrb[29].mxu1 }
 0x1f0   :  { %1723 = vrcp.f32 %v849_v43  ;;  %v850_v16 = vadd.f32 1.0, %v1704_v13  ;;  %v671_v17 = vadd.f32 %v2129_v26, %v670_v15  ;;  %v1471_v53 = vpop.f32.mrb[30].mxu1 }
 0x1f1   :  { %v1706_v19 = vpop.eup %1705  ;;  %1725 = vrcp.f32 %v852_v48  ;;  %v1311_v20 = vmul.f32 -1.442695, %v679_v14  ;;  %v682_v57 = vadd.f32 %v1471_v53, %v2129_v26  ;;  %v673_v22 = vpop.f32.mrb[31].mxu1 }
 0x1f2   :  { %v1708_v25 = vpop.eup %1707  ;;  %1727 = vrcp.f32 %v850_v16  ;;  %v1309_v7 = vmul.f32 -1.442695, %v671_v17  ;;  %v674_v27 = vadd.f32 %v2129_v26, %v673_v22 }
 0x1f3   :  { %v1710_v29 = vpop.eup %1709  ;;  %1729 = vpow2.f32 %v1311_v20  ;;  %v1312_v12 = vmul.f32 -1.442695, %v682_v57 }
 0x1f4   :  { %v1712_v30 = vpop.eup %1711  ;;  %1731 = vpow2.f32 %v1309_v7  ;;  %v1310_v32 = vmul.f32 -1.442695, %v674_v27  ;;  %v942_v18 = vpack.c.bf16 %v1710_v29, %v1706_v19 }
 0x1f5   :  { %v1714_v33 = vpop.eup %1713  ;;  %1733 = vpow2.f32 %v1312_v12  ;;  %v941_v34 = vpack.c.bf16 %v1712_v30, %v1708_v25 }
 0x1f6   :  { %v1716_v35 = vpop.eup %1715  ;;  %v855_v36 = vadd.f32 1.0, %v1714_v33  ;;  %1735 = vpow2.f32 %v1310_v32  ;;  %v1474_v58 = vpop.f32.mrb[32].mxu1 }
 0x1f7   :  { %v1718_v23 = vpop.eup %1717  ;;  %v853_v37 = vadd.f32 1.0, %v1716_v35  ;;  %v695_v38 = vadd.f32 %v1474_v58, %v2129_v26  ;;  %v686_v39 = vpop.f32.mrb[33].mxu1  ;;  %1504 = vmatprep.mubr.bf16.mxu0 %v941_v34 }
 0x1f8   :  { %v1720_v40 = vpop.eup %1719  ;;  %1737 = vrcp.f32 %v855_v36  ;;  %v856_v41 = vadd.f32 1.0, %v1718_v23  ;;  %v687_v42 = vadd.f32 %v2129_v26, %v686_v39  ;;  %v1475_v44 = vpop.f32.mrb[34].mxu1  ;;  %1505 = vmatmul.mubr.bf16.vlgmr.msra.gmra.mrb[16].mxu0 %v942_v18 }
 0x1f9   :  { %v1722_v45 = vpop.eup %1721  ;;  %1739 = vrcp.f32 %v853_v37  ;;  %v854_v46 = vadd.f32 1.0, %v1720_v40  ;;  %v1315_v47 = vmul.f32 -1.442695, %v695_v38  ;;  %v698_v49 = vadd.f32 %v1475_v44, %v2129_v26  ;;  %v689_v50 = vpop.f32.mrb[35].mxu1 }
 0x1fa   :  { %v1724_v51 = vpop.eup %1723  ;;  %1741 = vrcp.f32 %v856_v41  ;;  %v1313_v52 = vmul.f32 -1.442695, %v687_v42  ;;  %v690_v54 = vadd.f32 %v2129_v26, %v689_v50 }
 0x1fb   :  { %v1726_v21 = vpop.eup %1725  ;;  %1743 = vrcp.f32 %v854_v46  ;;  %v1316_v55 = vmul.f32 -1.442695, %v698_v49 }
 0x1fc   :  { %v1728_v56 = vpop.eup %1727  ;;  %1745 = vpow2.f32 %v1315_v47  ;;  %v1314_v59 = vmul.f32 -1.442695, %v690_v54  ;;  %v944_v60 = vpack.c.bf16 %v1726_v21, %v1722_v45 }
 0x1fd   :  { %v1730_v62 = vpop.eup %1729  ;;  %1747 = vpow2.f32 %v1313_v52  ;;  %v943_v61 = vpack.c.bf16 %v1728_v56, %v1724_v51 }
 0x1fe   :  { %v1732_v63 = vpop.eup %1731  ;;  %v859_v0 = vadd.f32 1.0, %v1730_v62  ;;  %1749 = vpow2.f32 %v1316_v55  ;;  %v1478_v1 = vpop.f32.mrb[36].mxu1 }
 0x1ff   :  { %v1734_v24 = vpop.eup %1733  ;;  %v857_v2 = vadd.f32 1.0, %v1732_v63  ;;  %1751 = vpow2.f32 %v1314_v59  ;;  %v711_v3 = vadd.f32 %v1478_v1, %v2129_v26  ;;  %v702_v4 = vpop.f32.mrb[37].mxu1  ;;  %1508 = vmatprep.mubr.bf16.mxu0 %v943_v61 }
 0x200   :  { %v1736_v28 = vpop.eup %1735  ;;  %1753 = vrcp.f32 %v859_v0  ;;  %v860_v5 = vadd.f32 1.0, %v1734_v24  ;;  %v703_v6 = vadd.f32 %v2129_v26, %v702_v4  ;;  %v1479_v31 = vpop.f32.mrb[38].mxu1  ;;  %1509 = vmatmul.mubr.bf16.gmra.mrb[20].mxu0 %v944_v60 }
 0x201   :  { %1755 = vrcp.f32 %v857_v2  ;;  %v858_v8 = vadd.f32 1.0, %v1736_v28  ;;  %v1319_v9 = vmul.f32 -1.442695, %v711_v3  ;;  %v714_v10 = vadd.f32 %v1479_v31, %v2129_v26  ;;  %v705_v43 = vpop.f32.mrb[39].mxu1 }
 0x202   :  { %v1738_v11 = vpop.eup %1737  ;;  %1757 = vrcp.f32 %v860_v5  ;;  %v1317_v13 = vmul.f32 -1.442695, %v703_v6  ;;  %v706_v48 = vadd.f32 %v2129_v26, %v705_v43 }
 0x203   :  { %v1740_v14 = vpop.eup %1739  ;;  %1759 = vrcp.f32 %v858_v8  ;;  %v1320_v15 = vmul.f32 -1.442695, %v714_v10 }
 0x204   :  { %v1742_v16 = vpop.eup %1741  ;;  %1761 = vpow2.f32 %v1319_v9  ;;  %v1318_v17 = vmul.f32 -1.442695, %v706_v48 }
 0x205   :  { %v1744_v53 = vpop.eup %1743  ;;  %1763 = vpow2.f32 %v1317_v13  ;;  %v946_v19 = vpack.c.bf16 %v1742_v16, %v1738_v11 }
 0x206   :  { %v1746_v20 = vpop.eup %1745  ;;  %1765 = vpow2.f32 %v1320_v15  ;;  %v1482_v57 = vpop.f32.mrb[40].mxu1  ;;  %v945_v22 = vpack.c.bf16 %v1744_v53, %v1740_v14 }
 0x207   :  { %v1748_v25 = vpop.eup %1747  ;;  %v863_v7 = vadd.f32 1.0, %v1746_v20  ;;  %1767 = vpow2.f32 %v1318_v17  ;;  %v727_v27 = vadd.f32 %v1482_v57, %v2129_v26  ;;  %v718_v29 = vpop.f32.mrb[41].mxu1 }
 0x208   :  { %v1750_v12 = vpop.eup %1749  ;;  %v861_v30 = vadd.f32 1.0, %v1748_v25  ;;  %v719_v32 = vadd.f32 %v2129_v26, %v718_v29  ;;  %v1483_v18 = vpop.f32.mrb[42].mxu1  ;;  %1512 = vmatprep.mubr.bf16.mxu0 %v945_v22 }
 0x209   :  { %v1752_v33 = vpop.eup %1751  ;;  %1769 = vrcp.f32 %v863_v7  ;;  %v864_v34 = vadd.f32 1.0, %v1750_v12  ;;  %v1323_v35 = vmul.f32 -1.442695, %v727_v27  ;;  %v730_v36 = vadd.f32 %v1483_v18, %v2129_v26  ;;  %v721_v58 = vpop.f32.mrb[43].mxu1  ;;  %1513 = vmatmul.mubr.bf16.gmra.mrb[24].mxu0 %v946_v19 }
 0x20a   :  { %v1754_v23 = vpop.eup %1753  ;;  %1771 = vrcp.f32 %v861_v30  ;;  %v862_v37 = vadd.f32 1.0, %v1752_v33  ;;  %v1321_v38 = vmul.f32 -1.442695, %v719_v32  ;;  %v722_v39 = vadd.f32 %v2129_v26, %v721_v58 }
 0x20b   :  { %v1756_v40 = vpop.eup %1755  ;;  %1773 = vrcp.f32 %v864_v34  ;;  %v1324_v41 = vmul.f32 -1.442695, %v730_v36 }
 0x20c   :  { %v1758_v42 = vpop.eup %1757  ;;  %1775 = vrcp.f32 %v862_v37  ;;  %v1322_v44 = vmul.f32 -1.442695, %v722_v39 }
 0x20d   :  { %v1760_v45 = vpop.eup %1759  ;;  %1777 = vpow2.f32 %v1323_v35  ;;  %v948_v46 = vpack.c.bf16 %v1758_v42, %v1754_v23 }
 0x20e   :  { %v1762_v47 = vpop.eup %1761  ;;  %1779 = vpow2.f32 %v1321_v38  ;;  %v1486_v49 = vpop.f32.mrb[44].mxu1  ;;  %v947_v50 = vpack.c.bf16 %v1760_v45, %v1756_v40 }
 0x20f   :  { %v1764_v51 = vpop.eup %1763  ;;  %v867_v52 = vadd.f32 1.0, %v1762_v47  ;;  %1781 = vpow2.f32 %v1324_v41  ;;  %v743_v54 = vadd.f32 %v1486_v49, %v2129_v26  ;;  %v734_v21 = vpop.f32.mrb[45].mxu1 }
 0x210   :  { %v1766_v55 = vpop.eup %1765  ;;  %v865_v56 = vadd.f32 1.0, %v1764_v51  ;;  %1783 = vpow2.f32 %v1322_v44  ;;  %v735_v59 = vadd.f32 %v2129_v26, %v734_v21  ;;  %v1487_v60 = vpop.f32.mrb[46].mxu1  ;;  %1516 = vmatprep.mubr.bf16.mxu0 %v947_v50  ;;  %v2166_v44 = vld [vmem:[%s2218_s6] ss:$0 sm:$0xff]  ;;  %s1841_s6 = smov [#allocation2]  }
 0x211   :  { %v1768_v62 = vpop.eup %1767  ;;  %1785 = vrcp.f32 %v867_v52  ;;  %v868_v61 = vadd.f32 1.0, %v1766_v55  ;;  %v1327_v63 = vmul.f32 -1.442695, %v743_v54  ;;  %v746_v0 = vadd.f32 %v1487_v60, %v2129_v26  ;;  %v737_v1 = vpop.f32.mrb[47].mxu1  ;;  %1517 = vmatmul.mubr.bf16.gmra.mrb[28].mxu0 %v948_v46  ;;  %s1226_s28 = sshll.u32 %s1841_s6, 4  ;;  %s1227_s28 = int_to_ptr.vmem [resolvable:$true] %s1226_s28 }
 0x212   :  { %1787 = vrcp.f32 %v865_v56  ;;  %v866_v24 = vadd.f32 1.0, %v1768_v62  ;;  %v1325_v2 = vmul.f32 -1.442695, %v735_v59  ;;  %v738_v3 = vadd.f32 %v2129_v26, %v737_v1  ;;  %s1817_s29 = scalar_lea.vmem %s1227_s28, 4096  ;;  %p1822_p1 = scmp.lt.s32.totalorder %s1227_s28, %s1227_s28 }
 0x213   :  { %v1770_v4 = vpop.eup %1769  ;;  %1789 = vrcp.f32 %v868_v61  ;;  %v1328_v28 = vmul.f32 -1.442695, %v746_v0  ;;  %p1818_p0 = scmp.ne.s32.totalorder %s1227_s28, %s1817_s29  ;;  %p1823_p2 = scmp.lt.s32.totalorder %s1817_s29, %s1817_s29 }
 0x214   :  { %v1772_v5 = vpop.eup %1771  ;;  %1791 = vrcp.f32 %v866_v24  ;;  %v1326_v6 = vmul.f32 -1.442695, %v738_v3 }
 0x215   :  { %v1774_v31 = vpop.eup %1773  ;;  %1793 = vpow2.f32 %v1327_v63  ;;  %p1824_p3 = por %p1823_p2, %p1822_p1 }
 0x216   :  { %v1776_v8 = vpop.eup %1775  ;;  %1795 = vpow2.f32 %v1325_v2  ;;  %v950_v9 = vpack.c.bf16 %v1774_v31, %v1770_v4 }
 0x217   :  { %v1778_v10 = vpop.eup %1777  ;;  %1797 = vpow2.f32 %v1328_v28  ;;  %v949_v43 = vpack.c.bf16 %v1776_v8, %v1772_v5  ;;  %p1825_p4 = pnand %p1824_p3, %p1818_p0 }
 0x218   :  { %v1780_v11 = vpop.eup %1779  ;;  %v871_v13 = vadd.f32 1.0, %v1778_v10  ;;  %1799 = vpow2.f32 %v1326_v6 }
 0x219   :  { %v1782_v48 = vpop.eup %1781  ;;  %v869_v14 = vadd.f32 1.0, %v1780_v11  ;;  %1520 = vmatprep.mubr.bf16.mxu0 %v949_v43 }
 0x21a   :  { %v1784_v26 = vpop.eup %1783  ;;  %1801 = vrcp.f32 %v871_v13  ;;  %v872_v15 = vadd.f32 1.0, %v1782_v48  ;;  %1521 = vmatmul.mubr.bf16.gmra.mrb[32].mxu0 %v950_v9 }
 0x21b   :  { %v1786_v16 = vpop.eup %1785  ;;  %1803 = vrcp.f32 %v869_v14  ;;  %v870_v17 = vadd.f32 1.0, %v1784_v26 }
 0x21c   :  { %v1788_v53 = vpop.eup %1787  ;;  %1805 = vrcp.f32 %v872_v15 }
 0x21d   :  { %v1790_v19 = vpop.eup %1789  ;;  %1807 = vrcp.f32 %v870_v17 }
 0x21e   :  { %v1792_v20 = vpop.eup %1791  ;;  %v952_v57 = vpack.c.bf16 %v1790_v19, %v1786_v16 }
 0x21f   :  { %v1794_v22 = vpop.eup %1793  ;;  %v951_v25 = vpack.c.bf16 %v1792_v20, %v1788_v53 }
 0x220   :  { %v1796_v7 = vpop.eup %1795  ;;  %v875_v27 = vadd.f32 1.0, %v1794_v22 }
 0x221   :  { %v1798_v29 = vpop.eup %1797  ;;  %v873_v12 = vadd.f32 1.0, %v1796_v7  ;;  %1524 = vmatprep.mubr.bf16.mxu0 %v951_v25 }
 0x222   :  { %v1800_v30 = vpop.eup %1799  ;;  %1809 = vrcp.f32 %v875_v27  ;;  %v876_v32 = vadd.f32 1.0, %v1798_v29  ;;  %1525 = vmatmul.mubr.bf16.gmra.mrb[36].mxu0 %v952_v57 }
 0x223   :  { %1811 = vrcp.f32 %v873_v12  ;;  %v874_v18 = vadd.f32 1.0, %v1800_v30 }
 0x224   :  { %v1802_v33 = vpop.eup %1801  ;;  %1813 = vrcp.f32 %v876_v32 }
 0x225   :  { %v1804_v34 = vpop.eup %1803  ;;  %1815 = vrcp.f32 %v874_v18 }
 0x226   :  { %v1806_v35 = vpop.eup %1805 }
 0x227   :  { %v1808_v36 = vpop.eup %1807  ;;  %v954_v58 = vpack.c.bf16 %v1806_v35, %v1802_v33 }
 0x228   :  { %v953_v23 = vpack.c.bf16 %v1808_v36, %v1804_v34 }
 0x22a   :  { %1528 = vmatprep.mubr.bf16.mxu0 %v953_v23 }
 0x22b   :  { %1529 = vmatmul.mubr.bf16.gmra.mrb[40].mxu0 %v954_v58 }
 0x22c   :  { %v1810_v37 = vpop.eup %1809 }
 0x22d   :  { %v1812_v38 = vpop.eup %1811 }
 0x22e   :  { %v1814_v39 = vpop.eup %1813 }
 0x22f   :  { %v1816_v40 = vpop.eup %1815  ;;  %v956_v41 = vpack.c.bf16 %v1814_v39, %v1810_v37 }
 0x230   :  { %v955_v42 = vpack.c.bf16 %v1816_v40, %v1812_v38 }
 0x232   :  { %1532 = vmatprep.mubr.bf16.mxu0 %v955_v42 }
 0x233   :  { %1533 = vmatmul.mubr.bf16.gmra.mrb[44].mxu0 %v956_v41 }
 0x2cb   :  { %v1506_v45 = vpop.f32.mrb[16].mxu0 }
 0x2cc   :  { %v1071_v46 = vadd.f32 %v1506_v45, %v2166_v44  ;;  %v1062_v47 = vpop.f32.mrb[17].mxu0 }
 0x2cd   :  { %v1063_v49 = vadd.f32 %v2166_v44, %v1062_v47  ;;  %v1507_v50 = vpop.f32.mrb[18].mxu0 }
 0x2ce   :  { %1191 = vst [vmem:[#allocation2 + $0x10] sm:$0xff] %v1071_v46  ;;  %v1074_v51 = vadd.f32 %v1507_v50, %v2166_v44  ;;  %v1065_v52 = vpop.f32.mrb[19].mxu0 }
 0x2cf   :  { %1189 = vst [vmem:[#allocation2] sm:$0xff] %v1063_v49  ;;  %v1066_v54 = vadd.f32 %v2166_v44, %v1065_v52 }
 0x2d0   :  { %1192 = vst [vmem:[#allocation2 + $0x18] sm:$0xff] %v1074_v51 }
 0x2d1   :  { %1190 = vst [vmem:[#allocation2 + $0x8] sm:$0xff] %v1066_v54 }
 0x2d3   :  { %v1510_v21 = vpop.f32.mrb[20].mxu0 }
 0x2d4   :  { %v1087_v55 = vadd.f32 %v1510_v21, %v2166_v44  ;;  %v1078_v56 = vpop.f32.mrb[21].mxu0 }
 0x2d5   :  { %v1079_v59 = vadd.f32 %v2166_v44, %v1078_v56  ;;  %v1511_v60 = vpop.f32.mrb[22].mxu0 }
 0x2d6   :  { %1195 = vst [vmem:[#allocation2 + $0x30] sm:$0xff] %v1087_v55  ;;  %v1090_v62 = vadd.f32 %v1511_v60, %v2166_v44  ;;  %v1081_v61 = vpop.f32.mrb[23].mxu0 }
 0x2d7   :  { %1193 = vst [vmem:[#allocation2 + $0x20] sm:$0xff] %v1079_v59  ;;  %v1082_v63 = vadd.f32 %v2166_v44, %v1081_v61 }
 0x2d8   :  { %1196 = vst [vmem:[#allocation2 + $0x38] sm:$0xff] %v1090_v62 }
 0x2d9   :  { %1194 = vst [vmem:[#allocation2 + $0x28] sm:$0xff] %v1082_v63 }
 0x2dc   :  { %v1514_v0 = vpop.f32.mrb[24].mxu0 }
 0x2dd   :  { %v1103_v1 = vadd.f32 %v1514_v0, %v2166_v44  ;;  %v1094_v24 = vpop.f32.mrb[25].mxu0 }
 0x2de   :  { %v1095_v2 = vadd.f32 %v2166_v44, %v1094_v24  ;;  %v1515_v3 = vpop.f32.mrb[26].mxu0 }
 0x2df   :  { %1199 = vst [vmem:[#allocation2 + $0x50] sm:$0xff] %v1103_v1  ;;  %v1106_v4 = vadd.f32 %v1515_v3, %v2166_v44  ;;  %v1097_v28 = vpop.f32.mrb[27].mxu0 }
 0x2e0   :  { %1197 = vst [vmem:[#allocation2 + $0x40] sm:$0xff] %v1095_v2  ;;  %v1098_v5 = vadd.f32 %v2166_v44, %v1097_v28 }
 0x2e1   :  { %1200 = vst [vmem:[#allocation2 + $0x58] sm:$0xff] %v1106_v4 }
 0x2e2   :  { %1198 = vst [vmem:[#allocation2 + $0x48] sm:$0xff] %v1098_v5 }
 0x2e4   :  { %v1518_v6 = vpop.f32.mrb[28].mxu0 }
 0x2e5   :  { %v1119_v31 = vadd.f32 %v1518_v6, %v2166_v44  ;;  %v1110_v8 = vpop.f32.mrb[29].mxu0 }
 0x2e6   :  { %v1111_v9 = vadd.f32 %v2166_v44, %v1110_v8  ;;  %v1519_v10 = vpop.f32.mrb[30].mxu0 }
 0x2e7   :  { %1203 = vst [vmem:[#allocation2 + $0x70] sm:$0xff] %v1119_v31  ;;  %v1122_v43 = vadd.f32 %v1519_v10, %v2166_v44  ;;  %v1113_v11 = vpop.f32.mrb[31].mxu0 }
 0x2e8   :  { %1201 = vst [vmem:[#allocation2 + $0x60] sm:$0xff] %v1111_v9  ;;  %v1114_v13 = vadd.f32 %v2166_v44, %v1113_v11 }
 0x2e9   :  { %1204 = vst [vmem:[#allocation2 + $0x78] sm:$0xff] %v1122_v43 }
 0x2ea   :  { %1202 = vst [vmem:[#allocation2 + $0x68] sm:$0xff] %v1114_v13 }
 0x2ed   :  { %v1522_v48 = vpop.f32.mrb[32].mxu0 }
 0x2ee   :  { %v1135_v14 = vadd.f32 %v1522_v48, %v2166_v44  ;;  %v1126_v26 = vpop.f32.mrb[33].mxu0 }
 0x2ef   :  { %v1127_v15 = vadd.f32 %v2166_v44, %v1126_v26  ;;  %v1523_v16 = vpop.f32.mrb[34].mxu0 }
 0x2f0   :  { %1207 = vst [vmem:[#allocation2 + $0x90] sm:$0xff] %v1135_v14  ;;  %v1138_v17 = vadd.f32 %v1523_v16, %v2166_v44  ;;  %v1129_v53 = vpop.f32.mrb[35].mxu0 }
 0x2f1   :  { %1205 = vst [vmem:[#allocation2 + $0x80] sm:$0xff] %v1127_v15  ;;  %v1130_v19 = vadd.f32 %v2166_v44, %v1129_v53 }
 0x2f2   :  { %1208 = vst [vmem:[#allocation2 + $0x98] sm:$0xff] %v1138_v17 }
 0x2f3   :  { %1206 = vst [vmem:[#allocation2 + $0x88] sm:$0xff] %v1130_v19 }
 0x2f5   :  { %v1526_v20 = vpop.f32.mrb[36].mxu0 }
 0x2f6   :  { %v1151_v57 = vadd.f32 %v1526_v20, %v2166_v44  ;;  %v1142_v22 = vpop.f32.mrb[37].mxu0 }
 0x2f7   :  { %v1143_v25 = vadd.f32 %v2166_v44, %v1142_v22  ;;  %v1527_v7 = vpop.f32.mrb[38].mxu0 }
 0x2f8   :  { %1211 = vst [vmem:[#allocation2 + $0xb0] sm:$0xff] %v1151_v57  ;;  %v1154_v27 = vadd.f32 %v1527_v7, %v2166_v44  ;;  %v1145_v29 = vpop.f32.mrb[39].mxu0 }
 0x2f9   :  { %1209 = vst [vmem:[#allocation2 + $0xa0] sm:$0xff] %v1143_v25  ;;  %v1146_v12 = vadd.f32 %v2166_v44, %v1145_v29 }
 0x2fa   :  { %1212 = vst [vmem:[#allocation2 + $0xb8] sm:$0xff] %v1154_v27 }
 0x2fb   :  { %1210 = vst [vmem:[#allocation2 + $0xa8] sm:$0xff] %v1146_v12 }
 0x2fe   :  { %v1530_v30 = vpop.f32.mrb[40].mxu0 }
 0x2ff   :  { %v1167_v32 = vadd.f32 %v1530_v30, %v2166_v44  ;;  %v1158_v18 = vpop.f32.mrb[41].mxu0 }
 0x300   :  { %v1159_v33 = vadd.f32 %v2166_v44, %v1158_v18  ;;  %v1531_v34 = vpop.f32.mrb[42].mxu0 }
 0x301   :  { %1215 = vst [vmem:[#allocation2 + $0xd0] sm:$0xff] %v1167_v32  ;;  %v1170_v35 = vadd.f32 %v1531_v34, %v2166_v44  ;;  %v1161_v36 = vpop.f32.mrb[43].mxu0 }
 0x302   :  { %1213 = vst [vmem:[#allocation2 + $0xc0] sm:$0xff] %v1159_v33  ;;  %v1162_v58 = vadd.f32 %v2166_v44, %v1161_v36 }
 0x303   :  { %1216 = vst [vmem:[#allocation2 + $0xd8] sm:$0xff] %v1170_v35 }
 0x304   :  { %1214 = vst [vmem:[#allocation2 + $0xc8] sm:$0xff] %v1162_v58 }
 0x306   :  { %v1534_v23 = vpop.f32.mrb[44].mxu0 }
 0x307   :  { %v1183_v37 = vadd.f32 %v1534_v23, %v2166_v44  ;;  %v1174_v38 = vpop.f32.mrb[45].mxu0 }
 0x308   :  { %v1175_v39 = vadd.f32 %v2166_v44, %v1174_v38  ;;  %v1535_v40 = vpop.f32.mrb[46].mxu0 }
 0x309   :  { %1219 = vst [vmem:[#allocation2 + $0xf0] sm:$0xff] %v1183_v37  ;;  %v1186_v41 = vadd.f32 %v1535_v40, %v2166_v44  ;;  %v1177_v42 = vpop.f32.mrb[47].mxu0 }
 0x30a   :  { %1217 = vst [vmem:[#allocation2 + $0xe0] sm:$0xff] %v1175_v39  ;;  %v1178_v45 = vadd.f32 %v2166_v44, %v1177_v42 }
 0x30b   :  { %1220 = vst [vmem:[#allocation2 + $0xf8] sm:$0xff] %v1186_v41 }
 0x30c   :  { %1218 = vst [vmem:[#allocation2 + $0xe8] sm:$0xff] %v1178_v45 }
 0x30d   :  { %1828 = shalt.err (!%p1825_p4)
}
 0x30e   :  { %s1829_s9 = scalar_lea.hbm %s2219_s7, 4096 }
 0x30f   :  { %p1830_p5 = scmp.ne.s32.totalorder %s2219_s7, %s1829_s9  ;;  %p1833_p6 = scmp.lt.u32.totalorder %s1829_s9, %s2219_s7 }
 0x311   :  { %p1835_p7 = pnand %p1833_p6, %p1830_p5 }
 0x313   :  { %1838 = shalt.err (!%p1835_p7)
}
 0x314   :  { %s1842_s2 = smov 128   ;;  %s1843_s3 = smov 8  }
 0x315   :  { %1232 = dma.vmem_to_hbm [thread:$0]  %s1227_s28, 4096, %s2219_s7, [#allocation3], %s1842_s2, %s1842_s2, %s1843_s3  }
 0x316   :  { %1839 = dma.done.wait [#allocation3], 4096  }
 0x317   :  { %1840 = vsyncadd [#allocation3], 4294963200 }
 0x318   :  { %1236 = vsyncpa [#allocation3], 1 }

</bundles_post_ra>
